<compile_context>
chip_gen: v5e
topology: v5e:2x2
jax: 0.10.0
libtpu: 0.0.40
codegen_flags: <defaults>
</compile_context>

<pallas_src>
import functools
import math

import jax
import jax.numpy as jnp
from jax import lax
from jax.experimental import pallas as pl
from jax.experimental.pallas import tpu as pltpu


def _round_up(x, m):
    return ((x + m - 1) // m) * m


def _gelu_exact(x):
    # x * 0.5 * (1 + erf(x / sqrt(2)))  -- matches the PyTorch reference gelu.
    return x * 0.5 * (1.0 + lax.erf(x / math.sqrt(2.0)))


def bert_intermediate_kernel(x_ref, w_ref, b_ref, o_ref):
    # x_ref: (tm, K)   activation tile (full K)
    # w_ref: (K, tn)   weight tile in (in, out) layout -> MXU-native RHS
    # b_ref: (1, tn)   bias tile (f32)
    # o_ref: (tm, tn)  output tile
    y = jnp.dot(x_ref[...], w_ref[...], preferred_element_type=jnp.float32)
    y = y + b_ref[...]                      # f32 bias, broadcast over rows
    o_ref[...] = _gelu_exact(y).astype(o_ref.dtype)


def _vmem_budget_bytes():
    cap = 64 * 1024 * 1024                  # conservative fallback (v7x-sized)
    try:
        info = pltpu.get_tpu_info()
        cap = int(getattr(info, "vmem_capacity_bytes", cap))
    except Exception:
        pass
    # Leave headroom for compiler-internal scratch:
    #   128 MiB parts (v5e/v6e) -> ~96 MiB; 64 MiB parts (v7x) -> ~48 MiB.
    return (cap * 3) // 4


def _choose_tiles(M, K, N, in_isz, out_isz, budget, tm_max=1024):
    """Pick (tm, tn). Prefer tn == N (fully VMEM-resident weight)."""
    tn = N
    while True:
        # Conservative: count W (and bias) as double-buffered even though the
        # W block index is constant over the inner M sweep (loaded once).
        fixed = 2 * K * tn * in_isz + 2 * tn * 4
        per_row = 2 * K * in_isz + 2 * tn * out_isz     # x + out, double-buffered
        tm_fit = max(0, (budget - fixed) // per_row)
        tm = min(tm_max, _round_up(M, 8), (tm_fit // 8) * 8)
        if tm >= 8:
            return int(tm), int(tn)
        if tn <= 128:                       # unreachable for realistic BERT sizes
            return 8, int(tn)
        tn = max(128, _round_up(tn // 2, 128))


@functools.partial(jax.jit, static_argnames=("compute_dtype", "tm_max"))
def bert_intermediate(hidden_states, weight, bias, *,
                      compute_dtype=jnp.bfloat16, tm_max=1024):
    """hidden_states: (B, S, H); weight: (I, H) (PyTorch nn.Linear); bias: (I,)."""
    B, S, H = hidden_states.shape
    I = weight.shape[0]
    out_dtype = hidden_states.dtype
    M, K, N = B * S, H, I

    # One-time layout/dtype prep (tiny vs. per-call activation traffic):
    #   * transpose W once to (K, N) so the RHS contraction dim is on sublanes,
    #   * cast x / W to the compute dtype (default bf16): half the HBM bytes,
    #     native-rate MXU; accumulation stays f32 inside the kernel.
    x2d = hidden_states.reshape(M, K)
    w2d = weight.T
    if compute_dtype is not None:
        x2d = x2d.astype(compute_dtype)
        w2d = w2d.astype(compute_dtype)
    b2d = bias.reshape(1, N).astype(jnp.float32)

    in_isz = jnp.dtype(x2d.dtype).itemsize
    out_isz = jnp.dtype(out_dtype).itemsize
    budget = _vmem_budget_bytes()
    tm, tn = _choose_tiles(M, K, N, in_isz, out_isz, budget, tm_max=tm_max)

    # N outer, M inner: the W / bias block index is constant over the inner M
    # sweep, so each W tile is DMA'd once and held resident; with tn == N (the
    # common BERT case) the whole weight is loaded exactly once per call.
    grid = (pl.cdiv(N, tn), pl.cdiv(M, tm))

    out2d = pl.pallas_call(
        bert_intermediate_kernel,
        out_shape=jax.ShapeDtypeStruct((M, N), out_dtype),
        grid_spec=pltpu.PrefetchScalarGridSpec(
            num_scalar_prefetch=0,
            grid=grid,
            in_specs=[
                pl.BlockSpec((tm, K), lambda j, i: (i, 0)),   # x tile (full K)
                pl.BlockSpec((K, tn), lambda j, i: (0, j)),   # resident W tile
                pl.BlockSpec((1, tn), lambda j, i: (0, j)),   # bias tile
            ],
            out_specs=pl.BlockSpec((tm, tn), lambda j, i: (i, j)),
        ),
        compiler_params=pltpu.CompilerParams(
            dimension_semantics=("parallel", "parallel"),
            vmem_limit_bytes=int(budget),
        ),
    )(x2d, w2d, b2d)

    return out2d.reshape(B, S, N)


if __name__ == "__main__":
    # Small config: hidden_size=32, intermediate_size=128, batch=2, seq=8.
    B, S, H, I = 2, 8, 32, 128

    key = jax.random.PRNGKey(0)
    kx, kw, kb = jax.random.split(key, 3)
    hidden_states = jax.random.normal(kx, (B, S, H), dtype=jnp.float32)
    # Deterministic "nn.Linear"-style params (synthetic, not a checkpoint).
    bound = 1.0 / math.sqrt(H)
    weight = jax.random.uniform(kw, (I, H), minval=-bound, maxval=bound,
                                dtype=jnp.float32)
    bias = jax.random.uniform(kb, (I,), minval=-bound, maxval=bound,
                              dtype=jnp.float32)

    # Pure-JAX reference (exact erf-GELU, f32 throughout).
    ref = hidden_states @ weight.T + bias
    ref = ref * 0.5 * (1.0 + lax.erf(ref / math.sqrt(2.0)))

    # Default fast path: bf16 inputs, f32 accumulation + f32 GELU.
    out = jax.block_until_ready(bert_intermediate(hidden_states, weight, bias))
    assert out.shape == (B, S, I)
    assert jnp.allclose(out, ref, atol=2e-2, rtol=2e-2), \
        float(jnp.max(jnp.abs(out - ref)))

    # Bit-faithful path: f32 inputs, tight tolerance vs. the reference.
    out_f32 = jax.block_until_ready(
        bert_intermediate(hidden_states, weight, bias, compute_dtype=None))
    assert jnp.allclose(out_f32, ref, atol=1e-5, rtol=1e-5), \
        float(jnp.max(jnp.abs(out_f32 - ref)))

    print("KERNEL_OK")
</pallas_src>

<mosaic_0001>
module attributes {stable_mosaic.version = 11 : i64} {
  func.func @bert_intermediate_kernel(%arg0: i32, %arg1: i32, %arg2: memref<16x32xbf16, #tpu.memory_space<vmem>>, %arg3: memref<32x128xbf16, #tpu.memory_space<vmem>>, %arg4: memref<1x128xf32, #tpu.memory_space<vmem>>, %arg5: memref<16x128xf32, #tpu.memory_space<vmem>>) attributes {dimension_semantics = [#tpu.dimension_semantics<parallel>, #tpu.dimension_semantics<parallel>], iteration_bounds = array<i64: 1, 1>, scalar_prefetch = 0 : i64, scratch_operands = 0 : i64, tpu.core_type = #tpu.core_type<tc>, window_params = [{transform_indices = @transform_0, window_bounds = array<i64: 16, 32>}, {transform_indices = @transform_1, window_bounds = array<i64: 32, 128>}, {transform_indices = @transform_2, window_bounds = array<i64: 1, 128>}, {transform_indices = @transform_3, window_bounds = array<i64: 16, 128>}]} {
    %c0 = arith.constant 0 : index
    %c0_0 = arith.constant 0 : index
    %0 = vector.load %arg2[%c0, %c0_0] : memref<16x32xbf16, #tpu.memory_space<vmem>>, vector<16x32xbf16>
    %c0_1 = arith.constant 0 : index
    %c0_2 = arith.constant 0 : index
    %1 = vector.load %arg3[%c0_1, %c0_2] : memref<32x128xbf16, #tpu.memory_space<vmem>>, vector<32x128xbf16>
    %cst = arith.constant dense<0.000000e+00> : vector<16x128xf32>
    %2 = tpu.matmul %0, %1, %cst {dimension_numbers = #tpu.dot_dimension_numbers<[1], [0], [0], [1], [0, 0, 1, 1], [], []>} : vector<16x32xbf16>, vector<32x128xbf16>, vector<16x128xf32> -> vector<16x128xf32>
    %c0_3 = arith.constant 0 : index
    %c0_4 = arith.constant 0 : index
    %3 = vector.load %arg4[%c0_3, %c0_4] : memref<1x128xf32, #tpu.memory_space<vmem>>, vector<1x128xf32>
    %4 = vector.broadcast %3 : vector<1x128xf32> to vector<16x128xf32>
    %5 = arith.addf %2, %4 : vector<16x128xf32>
    %cst_5 = arith.constant 5.000000e-01 : f32
    %6 = vector.broadcast %cst_5 : f32 to vector<16x128xf32>
    %7 = arith.mulf %5, %6 : vector<16x128xf32>
    %cst_6 = arith.constant 1.41421354 : f32
    %8 = vector.broadcast %cst_6 : f32 to vector<16x128xf32>
    %9 = arith.divf %5, %8 : vector<16x128xf32>
    %10 = math.erf %9 : vector<16x128xf32>
    %cst_7 = arith.constant 1.000000e+00 : f32
    %11 = vector.broadcast %cst_7 : f32 to vector<16x128xf32>
    %12 = arith.addf %11, %10 : vector<16x128xf32>
    %13 = arith.mulf %7, %12 : vector<16x128xf32>
    %c0_8 = arith.constant 0 : index
    %c0_9 = arith.constant 0 : index
    %14 = vector.load %arg5[%c0_8, %c0_9] : memref<16x128xf32, #tpu.memory_space<vmem>>, vector<16x128xf32>
    tpu.vector_store %arg5[%c0_8, %c0_9], %13 {strides = array<i32>} : memref<16x128xf32, #tpu.memory_space<vmem>>, vector<16x128xf32>,
    return
  }
  func.func @transform_0(%arg0: i32, %arg1: i32) -> (i32, i32) {
    %c0_i32 = arith.constant 0 : i32
    %c0_i32_0 = arith.constant 0 : i32
    return %arg1, %c0_i32 : i32, i32
  }
  func.func @transform_1(%arg0: i32, %arg1: i32) -> (i32, i32) {
    %c0_i32 = arith.constant 0 : i32
    %c0_i32_0 = arith.constant 0 : i32
    return %c0_i32, %arg0 : i32, i32
  }
  func.func @transform_2(%arg0: i32, %arg1: i32) -> (i32, i32) {
    %c0_i32 = arith.constant 0 : i32
    %c0_i32_0 = arith.constant 0 : i32
    return %c0_i32, %arg0 : i32, i32
  }
  func.func @transform_3(%arg0: i32, %arg1: i32) -> (i32, i32) {
    %c0_i32 = arith.constant 0 : i32
    return %arg1, %arg0 : i32, i32
  }
}

</mosaic_0001>

<bundles_post_ra>
// kernel: bert_intermediate.1
= control target key start
LH: loop header
LB: loop body
LE: loop exit
PB: predicated region body
PF: predicated region fallthrough
CT: control target
= control target key end

     0   :  { %s283_s0 = inlined_call_operand.vmem [shape: bf16[16,32], index: 0, kind: input, shape index: {}]   ;;  %s284_s1 = inlined_call_operand.vmem [shape: bf16[32,128], index: 1, kind: input, shape index: {}]   ;;  %s285_s2 = inlined_call_operand.vmem [shape: f32[1,128], index: 2, kind: input, shape index: {}]   ;;  %s286_s3 = inlined_call_operand.hbm [shape: f32[16,128], index: 3, kind: output, shape index: {}]  }
   0x1   :  { %v193_v0 = vld [vmem:[%s284_s1 + $0x8] sm:$0xff] }
   0x2   :  { %8 = vsyncpa [#allocation3], 0  ;;  %53 = vmatpush.bf16.msra.mxu0 %v193_v0  ;;  %v192_v1 = vld [vmem:[%s284_s1] sm:$0xff]  ;;  %vm43_vm0 = vcmask 261120   ;;  %v231_v3 = vmov 1.4142135  }
   0x3   :  { %v191_v2 = vld [vmem:[%s283_s0] sm:$0xff]  ;;  %199 = vrcp.f32 %v231_v3  ;;  %s232_s0 = smov [#allocation2]   ;;  %s164_s21 = sshll.u32 %s286_s3, 4  ;;  %s165_s21 = int_to_ptr.hbm [resolvable:$true] %s164_s21 }
   0x4   :  { %v198_v9 = vld [vmem:[%s285_s2] ss:$0 sm:$0xff]  ;;  %s162_s1 = sshll.u32 %s232_s0, 4  ;;  %s233_s22 = smov 128   ;;  %s163_s1 = int_to_ptr.vmem [resolvable:$true] %s162_s1 }
   0x5   :  { %s234_s23 = smov 8  }
   0x6   :  { %54 = vmatpush.bf16.msra.mxu0 %v192_v1 }
   0x9   :  { %188 = vmatmul.msk.bf16.vlgmr.msra.gmra.mxu0 %vm43_vm0, %v191_v2  ;;  %v200_v4 = vpop.eup %199 }
   0xa   :  { %v64_v5 = vmul.f32 1.4142135, %v200_v4  ;;  %vm68_vm1 = vweird.f32 %v200_v4 }
   0xc   :  { %v65_v6 = vsub.f32 1.0, %v64_v5 }
   0xe   :  { %v66_v7 = vmul.f32 %v200_v4, %v65_v6 }
  0x10   :  { %v67_v8 = vadd.f32 %v200_v4, %v66_v7 }
  0x12   :  { %v69_v11 = vsel %vm68_vm1, %v200_v4, %v67_v8 }
  0x86   :  { %v56_v10 = vpop.f32.mrf.mxu0 }
  0x87   :  { %v267_v12 = vadd.f32 %v198_v9, %v56_v10 }
  0x89   :  { %v70_v13 = vmul.f32 %v69_v11, %v267_v12 }
  0x8b   :  { %v72_v14 = vmul.f32 %v70_v13, %v70_v13 }
  0x8d   :  { %v73_v15 = vmin.f32 %v72_v14, 16.0 }
  0x8e   :  { %v58_v16 = vpop.f32.mrf.mxu0 }
  0x8f   :  { %v74_v17 = vmul.f32 2.1237322e-06, %v73_v15  ;;  %v85_v18 = vmul.f32 3.8918573e-05, %v73_v15  ;;  %v270_v19 = vadd.f32 %v198_v9, %v58_v16 }
  0x91   :  { %v75_v20 = vadd.f32 0.00028619796, %v74_v17  ;;  %v86_v21 = vadd.f32 0.001143296, %v85_v18  ;;  %v273_v22 = vmul.f32 %v69_v11, %v270_v19  ;;  %v61_v18 = vmul.f32 0.5, %v267_v12 }
  0x92   :  { %v62_v12 = vmul.f32 0.5, %v270_v19 }
  0x93   :  { %v76_v23 = vmul.f32 %v75_v20, %v73_v15  ;;  %v87_v24 = vmul.f32 %v86_v21, %v73_v15  ;;  %v112_v25 = vmul.f32 %v273_v22, %v273_v22 }
  0x95   :  { %v88_v26 = vadd.f32 0.014752088, %v87_v24  ;;  %v113_v27 = vmin.f32 %v112_v25, 16.0  ;;  %v77_v28 = vadd.f32 0.0036580483, %v76_v23 }
  0x97   :  { %v89_v29 = vmul.f32 %v88_v26, %v73_v15  ;;  %v114_v30 = vmul.f32 2.1237322e-06, %v113_v27  ;;  %v125_v31 = vmul.f32 3.8918573e-05, %v113_v27  ;;  %v78_v34 = vmul.f32 %v77_v28, %v73_v15 }
  0x99   :  { %v90_v32 = vadd.f32 0.112945676, %v89_v29  ;;  %v115_v33 = vadd.f32 0.00028619796, %v114_v30  ;;  %v126_v35 = vadd.f32 0.001143296, %v125_v31 }
  0x9a   :  { %v79_v40 = vadd.f32 0.05243302, %v78_v34 }
  0x9b   :  { %v91_v36 = vmul.f32 %v90_v32, %v73_v15  ;;  %v116_v37 = vmul.f32 %v115_v33, %v113_v27  ;;  %v127_v38 = vmul.f32 %v126_v35, %v113_v27 }
  0x9c   :  { %v80_v46 = vmul.f32 %v79_v40, %v73_v15 }
  0x9d   :  { %v92_v39 = vadd.f32 0.4994258, %v91_v36  ;;  %v128_v41 = vadd.f32 0.014752088, %v127_v38  ;;  %v117_v43 = vadd.f32 0.0036580483, %v116_v37 }
  0x9e   :  { %v81_v50 = vadd.f32 0.18741608, %v80_v46 }
  0x9f   :  { %v93_v42 = vmul.f32 %v92_v39, %v73_v15  ;;  %v129_v44 = vmul.f32 %v128_v41, %v113_v27  ;;  %v118_v48 = vmul.f32 %v117_v43, %v113_v27 }
  0xa0   :  { %v82_v55 = vmul.f32 %v81_v50, %v73_v15 }
  0xa1   :  { %v94_v45 = vadd.f32 1.0, %v93_v42  ;;  %v130_v47 = vadd.f32 0.112945676, %v129_v44  ;;  %v119_v52 = vadd.f32 0.05243302, %v118_v48 }
  0xa2   :  { %v83_v61 = vadd.f32 1.1283791, %v82_v55 }
  0xa3   :  { %201 = vrcp.f32 %v94_v45  ;;  %v131_v49 = vmul.f32 %v130_v47, %v113_v27  ;;  %v120_v58 = vmul.f32 %v119_v52, %v113_v27  ;;  %v106_v60 = vand.u32 2147483648, %v94_v45 }
  0xa4   :  { %v104_v63 = vand.u32 2147483647, %v94_v45  ;;  %vm100_vm3 = vweird.f32 %v94_v45  ;;  %v84_v4 = vmul.f32 %v83_v61, %v70_v13 }
  0xa5   :  { %v132_v51 = vadd.f32 0.4994258, %v131_v49  ;;  %v121_v0 = vadd.f32 0.18741608, %v120_v58  ;;  %v107_v2 = vor.u32 1.1754944e-38, %v106_v60 }
  0xa6   :  { %vm105_vm5 = vcmp.eq.f32.partialorder %v104_v63, 8.507059e+37 }
  0xa7   :  { %v133_v53 = vmul.f32 %v132_v51, %v113_v27  ;;  %v122_v7 = vmul.f32 %v121_v0, %v113_v27 }
  0xa9   :  { %v202_v54 = vpop.eup %201  ;;  %v134_v57 = vadd.f32 1.0, %v133_v53  ;;  %v123_v15 = vadd.f32 1.1283791, %v122_v7 }
  0xaa   :  { %v96_v56 = vmul.f32 %v202_v54, %v94_v45  ;;  %vm101_vm2 = vweird.f32 %v202_v54 }
  0xab   :  { %203 = vrcp.f32 %v134_v57  ;;  %vm102_vm4 = vmor %vm100_vm3, %vm101_vm2  ;;  %v146_v14 = vand.u32 2147483648, %v134_v57  ;;  %v144_v17 = vand.u32 2147483647, %v134_v57  ;;  %vm140_vm7 = vweird.f32 %v134_v57 }
  0xac   :  { %v97_v59 = vsub.f32 1.0, %v96_v56  ;;  %v124_v24 = vmul.f32 %v123_v15, %v273_v22 }
  0xad   :  { %v147_v13 = vor.u32 1.1754944e-38, %v146_v14  ;;  %vm145_vm9 = vcmp.eq.f32.partialorder %v144_v17, 8.507059e+37 }
  0xae   :  { %v98_v62 = vmul.f32 %v202_v54, %v97_v59 }
  0xb0   :  { %v99_v1 = vadd.f32 %v202_v54, %v98_v62 }
  0xb1   :  { %v204_v3 = vpop.eup %203 }
  0xb2   :  { %v103_v5 = vsel %vm102_vm4, %v202_v54, %v99_v1  ;;  %v136_v8 = vmul.f32 %v204_v3, %v134_v57  ;;  %vm141_vm6 = vweird.f32 %v204_v3 }
  0xb3   :  { %v108_v6 = vsel %vm105_vm5, %v107_v2, %v103_v5  ;;  %vm142_vm8 = vmor %vm140_vm7, %vm141_vm6 }
  0xb4   :  { %v109_v9 = vmul.f32 %v108_v6, %v84_v4  ;;  %v137_v10 = vsub.f32 1.0, %v136_v8 }
  0xb6   :  { %v189_v11 = vclamps-f32 %v109_v9, 1.0  ;;  %v138_v16 = vmul.f32 %v204_v3, %v137_v10 }
  0xb8   :  { %v152_v20 = vadd.f32 1.0, %v189_v11  ;;  %v139_v21 = vadd.f32 %v204_v3, %v138_v16 }
  0xba   :  { %v154_v23 = vmul.f32 %v152_v20, %v61_v18  ;;  %v143_v25 = vsel %vm142_vm8, %v204_v3, %v139_v21 }
  0xbb   :  { %v148_v26 = vsel %vm145_vm9, %v147_v13, %v143_v25 }
  0xbc   :  { %156 = vst [vmem:[#allocation2] sm:$0xff] %v154_v23  ;;  %v149_v27 = vmul.f32 %v148_v26, %v124_v24 }
  0xbe   :  { %v190_v28 = vclamps-f32 %v149_v27, 1.0 }
  0xc0   :  { %v153_v29 = vadd.f32 1.0, %v190_v28 }
  0xc2   :  { %v155_v30 = vmul.f32 %v153_v29, %v62_v12 }
  0xc4   :  { %157 = vst [vmem:[#allocation2 + $0x8] sm:$0xff] %v155_v30 }
  0xc5   :  { %170 = dma.vmem_to_hbm [thread:$0]  %s163_s1, 256, %s165_s21, [#allocation3], %s233_s22, %s233_s22, %s234_s23  }
  0xc6   :  { %229 = dma.done.wait [#allocation3], 256  }
  0xc7   :  { %230 = vsyncadd [#allocation3], 4294967040 }
  0xc8   :  { %175 = vsyncpa [#allocation3], 1 }

</bundles_post_ra>
